<compile_context>
chip_gen: v7x
topology: tpu7x:2x2x1
jax: 0.10.0
libtpu: 0.0.40
codegen_flags: <defaults>
</compile_context>

<pallas_src>
import jax
import jax.numpy as jnp
import numpy as np
from jax.experimental import pallas as pl
from jax.experimental.pallas import tpu as pltpu

# MobileNetV2's classifier input width ("last_channel") is 1280.
D_IN, D_H1, D_H2, D_OUT = 1280, 256, 64, 2
D_H2_PAD = 128   # lane-dense padded fc2 width
D_OUT_PAD = 128  # lane-dense padded output width
TB_CAP = 512     # max batch-tile rows per grid step


def _round_up(n, m):
    return (n + m - 1) // m * m


def mlp_head_kernel(x_ref, w1_ref, b1_ref, w2_ref, b2_ref, w3_ref, b3_ref,
                    o_ref):
    # In-kernel bf16 cast of x (VPU; hidden under DMA/MXU) — no wrapper pass.
    x = x_ref[...].astype(jnp.bfloat16)
    # fc1 + ReLU  (bf16 operands, f32 MXU accumulation)
    h1 = jnp.dot(x, w1_ref[...],
                 preferred_element_type=jnp.float32) + b1_ref[...]
    h1 = jnp.maximum(h1, 0.0).astype(jnp.bfloat16)
    # fc2 + ReLU  (hidden width zero-padded to 128 lanes)
    h2 = jnp.dot(h1, w2_ref[...],
                 preferred_element_type=jnp.float32) + b2_ref[...]
    h2 = jnp.maximum(h2, 0.0).astype(jnp.bfloat16)
    # fc3 (no activation), lane-padded to 128 output columns
    out = jnp.dot(h2, w3_ref[...],
                  preferred_element_type=jnp.float32) + b3_ref[...]
    o_ref[...] = out.astype(o_ref.dtype)


def mlp_head_mobilenet(x, params):
    """x: [B, D_IN] float32 (or bf16).  params: dict w1,b1,w2,b2,w3,b3.

    Returns [B, 2] float32 logits.
    """
    B, d_in = x.shape
    assert d_in == D_IN

    # Balanced batch tiling; no pre-padding (partial last block is masked on
    # write; its garbage rows never feed anything downstream).
    n_steps = pl.cdiv(B, TB_CAP)
    if B > 256 and n_steps < 2:
        # Give v7x's second TensorCore work once x-tile traffic dominates.
        n_steps = 2
    TB = _round_up(pl.cdiv(B, n_steps), 8)
    n_steps = pl.cdiv(B, TB)

    # Weights/biases: constant index_map -> resident in VMEM across grid steps.
    const = lambda i: (0, 0)
    in_specs = [
        pl.BlockSpec((TB, D_IN), lambda i: (i, 0)),       # x batch tile (f32)
        pl.BlockSpec((D_IN, D_H1), const),                # w1
        pl.BlockSpec((1, D_H1), const),                   # b1
        pl.BlockSpec((D_H1, D_H2_PAD), const),            # w2 (lane padded)
        pl.BlockSpec((1, D_H2_PAD), const),               # b2 (lane padded)
        pl.BlockSpec((D_H2_PAD, D_OUT_PAD), const),       # w3 (lane padded)
        pl.BlockSpec((1, D_OUT_PAD), const),              # b3 (lane padded)
    ]
    out_spec = pl.BlockSpec((TB, D_OUT_PAD), lambda i: (i, 0))

    # Advisory cost estimate reflecting the work the kernel actually executes.
    rows = n_steps * TB
    flops = 2 * rows * (D_IN * D_H1 + D_H1 * D_H2_PAD + D_H2_PAD * D_OUT_PAD)
    weight_bytes = (D_IN * D_H1 + D_H1 * D_H2_PAD + D_H2_PAD * D_OUT_PAD) * 2 \
        + (D_H1 + D_H2_PAD + D_OUT_PAD) * 4
    bytes_accessed = (rows * D_IN * x.dtype.itemsize      # f32/bf16 x read
                      + weight_bytes                       # bf16 W, f32 b
                      + rows * D_OUT_PAD * 2)              # bf16 out write
    cost = pl.CostEstimate(flops=flops, transcendentals=0,
                           bytes_accessed=bytes_accessed)

    # VMEM budget: resident weights + double-buffered f32 x / bf16 out tiles.
    # ~7 MiB at TB=512; a 16 MiB limit is safe on v5e/v6e/v7x.
    vmem_limit = 16 * 1024 * 1024

    out_padded = pl.pallas_call(
        mlp_head_kernel,
        out_shape=jax.ShapeDtypeStruct((B, D_OUT_PAD), jnp.bfloat16),
        grid=(n_steps,),
        in_specs=in_specs,
        out_specs=out_spec,
        compiler_params=pltpu.CompilerParams(
            dimension_semantics=("parallel",),
            vmem_limit_bytes=vmem_limit),
        cost_estimate=cost,
    )(x, params["w1"], params["b1"], params["w2"], params["b2"],
      params["w3"], params["b3"])

    # TODO(synk): fuse this slice into the consumer (or keep logits bf16
    # downstream) to avoid re-reading the padded slab as a standalone XLA op.
    return out_padded[:B, :D_OUT].astype(jnp.float32)


def init_params(key):
    """nn.Linear-style init (U(-1/sqrt(in), 1/sqrt(in))).

    Weights stored transposed relative to PyTorch ([in, out]) and cast to
    bfloat16; biases kept f32 as [1, out] rows.  fc2 outputs and fc3 in/out
    are zero-padded to 128 lanes, which leaves the two real logits exact
    (padded h2 columns are ReLU(0)=0; padded w3 rows/columns are 0).
    """
    ks = jax.random.split(key, 6)

    def linear(kw, kb, fan_in, fan_out):
        bound = 1.0 / np.sqrt(fan_in)
        w = jax.random.uniform(kw, (fan_in, fan_out), jnp.float32,
                               minval=-bound, maxval=bound)
        b = jax.random.uniform(kb, (1, fan_out), jnp.float32,
                               minval=-bound, maxval=bound)
        return w, b

    w1, b1 = linear(ks[0], ks[1], D_IN, D_H1)
    w2, b2 = linear(ks[2], ks[3], D_H1, D_H2)
    w3, b3 = linear(ks[4], ks[5], D_H2, D_OUT)

    w2 = jnp.pad(w2, ((0, 0), (0, D_H2_PAD - D_H2)))
    b2 = jnp.pad(b2, ((0, 0), (0, D_H2_PAD - D_H2)))
    w3 = jnp.pad(w3, ((0, D_H2_PAD - D_H2), (0, D_OUT_PAD - D_OUT)))
    b3 = jnp.pad(b3, ((0, 0), (0, D_OUT_PAD - D_OUT)))

    return dict(w1=w1.astype(jnp.bfloat16), b1=b1,
                w2=w2.astype(jnp.bfloat16), b2=b2,
                w3=w3.astype(jnp.bfloat16), b3=b3)


def reference(x, p):
    """f32 reference following the same bf16 rounding points as the kernel."""
    hp = jax.lax.Precision.HIGHEST
    xf = x.astype(jnp.bfloat16).astype(jnp.float32)
    w1 = p["w1"].astype(jnp.float32)
    w2 = p["w2"].astype(jnp.float32)
    w3 = p["w3"].astype(jnp.float32)
    h1 = jnp.maximum(jnp.dot(xf, w1, precision=hp) + p["b1"], 0.0)
    h1 = h1.astype(jnp.bfloat16).astype(jnp.float32)
    h2 = jnp.maximum(jnp.dot(h1, w2, precision=hp) + p["b2"], 0.0)
    h2 = h2.astype(jnp.bfloat16).astype(jnp.float32)
    out = jnp.dot(h2, w3, precision=hp) + p["b3"]
    out = out.astype(jnp.bfloat16).astype(jnp.float32)
    return out[:, :D_OUT]


if __name__ == "__main__":
    key = jax.random.PRNGKey(0)
    k_params, k_x = jax.random.split(key)
    params = init_params(k_params)

    B = 8  # small inference batch; feature dim fixed at 1280 by the module
    x = jax.random.normal(k_x, (B, D_IN), jnp.float32)

    out = jax.block_until_ready(mlp_head_mobilenet(x, params))
    ref = jax.block_until_ready(reference(x, params))

    np.testing.assert_allclose(np.asarray(out), np.asarray(ref),
                               rtol=1e-2, atol=1e-2)
    assert out.shape == (B, D_OUT)

    print("KERNEL_OK")
</pallas_src>

<mosaic_0001>
module attributes {stable_mosaic.version = 11 : i64} {
  func.func @mlp_head_kernel(%arg0: i32, %arg1: memref<8x1280xf32, #tpu.memory_space<vmem>>, %arg2: memref<1280x256xbf16, #tpu.memory_space<vmem>>, %arg3: memref<1x256xf32, #tpu.memory_space<vmem>>, %arg4: memref<256x128xbf16, #tpu.memory_space<vmem>>, %arg5: memref<1x128xf32, #tpu.memory_space<vmem>>, %arg6: memref<128x128xbf16, #tpu.memory_space<vmem>>, %arg7: memref<1x128xf32, #tpu.memory_space<vmem>>, %arg8: memref<8x128xbf16, #tpu.memory_space<vmem>>) attributes {dimension_semantics = [#tpu.dimension_semantics<parallel>], iteration_bounds = array<i64: 1>, scalar_prefetch = 0 : i64, scratch_operands = 0 : i64, tpu.core_type = #tpu.core_type<tc>, window_params = [{transform_indices = @transform_0, window_bounds = array<i64: 8, 1280>}, {pipeline_mode = #tpu.pipeline_mode<synchronous>, transform_indices = @transform_1, window_bounds = array<i64: 1280, 256>}, {pipeline_mode = #tpu.pipeline_mode<synchronous>, transform_indices = @transform_2, window_bounds = array<i64: 1, 256>}, {pipeline_mode = #tpu.pipeline_mode<synchronous>, transform_indices = @transform_3, window_bounds = array<i64: 256, 128>}, {pipeline_mode = #tpu.pipeline_mode<synchronous>, transform_indices = @transform_4, window_bounds = array<i64: 1, 128>}, {pipeline_mode = #tpu.pipeline_mode<synchronous>, transform_indices = @transform_5, window_bounds = array<i64: 128, 128>}, {pipeline_mode = #tpu.pipeline_mode<synchronous>, transform_indices = @transform_6, window_bounds = array<i64: 1, 128>}, {transform_indices = @transform_7, window_bounds = array<i64: 8, 128>}]} {
    %c0 = arith.constant 0 : index
    %c0_0 = arith.constant 0 : index
    %0 = vector.load %arg1[%c0, %c0_0] : memref<8x1280xf32, #tpu.memory_space<vmem>>, vector<8x1280xf32>
    %1 = arith.truncf %0 : vector<8x1280xf32> to vector<8x1280xbf16>
    %c0_1 = arith.constant 0 : index
    %c0_2 = arith.constant 0 : index
    %2 = vector.load %arg2[%c0_1, %c0_2] : memref<1280x256xbf16, #tpu.memory_space<vmem>>, vector<1280x256xbf16>
    %cst = arith.constant dense<0.000000e+00> : vector<8x256xf32>
    %3 = tpu.matmul %1, %2, %cst {dimension_numbers = #tpu.dot_dimension_numbers<[1], [0], [0], [1], [0, 0, 1, 1], [], []>} : vector<8x1280xbf16>, vector<1280x256xbf16>, vector<8x256xf32> -> vector<8x256xf32>
    %c0_3 = arith.constant 0 : index
    %c0_4 = arith.constant 0 : index
    %4 = vector.load %arg3[%c0_3, %c0_4] : memref<1x256xf32, #tpu.memory_space<vmem>>, vector<1x256xf32>
    %5 = vector.broadcast %4 : vector<1x256xf32> to vector<8x256xf32>
    %6 = arith.addf %3, %5 : vector<8x256xf32>
    %cst_5 = arith.constant 0.000000e+00 : f32
    %7 = vector.broadcast %cst_5 : f32 to vector<8x256xf32>
    %8 = arith.maximumf %6, %7 : vector<8x256xf32>
    %9 = arith.truncf %8 : vector<8x256xf32> to vector<8x256xbf16>
    %c0_6 = arith.constant 0 : index
    %c0_7 = arith.constant 0 : index
    %10 = vector.load %arg4[%c0_6, %c0_7] : memref<256x128xbf16, #tpu.memory_space<vmem>>, vector<256x128xbf16>
    %cst_8 = arith.constant dense<0.000000e+00> : vector<8x128xf32>
    %11 = tpu.matmul %9, %10, %cst_8 {dimension_numbers = #tpu.dot_dimension_numbers<[1], [0], [0], [1], [0, 0, 1, 1], [], []>} : vector<8x256xbf16>, vector<256x128xbf16>, vector<8x128xf32> -> vector<8x128xf32>
    %c0_9 = arith.constant 0 : index
    %c0_10 = arith.constant 0 : index
    %12 = vector.load %arg5[%c0_9, %c0_10] : memref<1x128xf32, #tpu.memory_space<vmem>>, vector<1x128xf32>
    %13 = vector.broadcast %12 : vector<1x128xf32> to vector<8x128xf32>
    %14 = arith.addf %11, %13 : vector<8x128xf32>
    %cst_11 = arith.constant 0.000000e+00 : f32
    %15 = vector.broadcast %cst_11 : f32 to vector<8x128xf32>
    %16 = arith.maximumf %14, %15 : vector<8x128xf32>
    %17 = arith.truncf %16 : vector<8x128xf32> to vector<8x128xbf16>
    %c0_12 = arith.constant 0 : index
    %c0_13 = arith.constant 0 : index
    %18 = vector.load %arg6[%c0_12, %c0_13] : memref<128x128xbf16, #tpu.memory_space<vmem>>, vector<128x128xbf16>
    %cst_14 = arith.constant dense<0.000000e+00> : vector<8x128xf32>
    %19 = tpu.matmul %17, %18, %cst_14 {dimension_numbers = #tpu.dot_dimension_numbers<[1], [0], [0], [1], [0, 0, 1, 1], [], []>} : vector<8x128xbf16>, vector<128x128xbf16>, vector<8x128xf32> -> vector<8x128xf32>
    %c0_15 = arith.constant 0 : index
    %c0_16 = arith.constant 0 : index
    %20 = vector.load %arg7[%c0_15, %c0_16] : memref<1x128xf32, #tpu.memory_space<vmem>>, vector<1x128xf32>
    %21 = vector.broadcast %20 : vector<1x128xf32> to vector<8x128xf32>
    %22 = arith.addf %19, %21 : vector<8x128xf32>
    %23 = arith.truncf %22 : vector<8x128xf32> to vector<8x128xbf16>
    %c0_17 = arith.constant 0 : index
    %c0_18 = arith.constant 0 : index
    %24 = vector.load %arg8[%c0_17, %c0_18] : memref<8x128xbf16, #tpu.memory_space<vmem>>, vector<8x128xbf16>
    tpu.vector_store %arg8[%c0_17, %c0_18], %23 {strides = array<i32>} : memref<8x128xbf16, #tpu.memory_space<vmem>>, vector<8x128xbf16>,
    return
  }
  func.func @transform_0(%arg0: i32) -> (i32, i32) {
    %c0_i32 = arith.constant 0 : i32
    %c0_i32_0 = arith.constant 0 : i32
    return %arg0, %c0_i32 : i32, i32
  }
  func.func @transform_1(%arg0: i32) -> (i32, i32) {
    %c0_i32 = arith.constant 0 : i32
    %c0_i32_0 = arith.constant 0 : i32
    %c0_i32_1 = arith.constant 0 : i32
    return %c0_i32, %c0_i32_0 : i32, i32
  }
  func.func @transform_2(%arg0: i32) -> (i32, i32) {
    %c0_i32 = arith.constant 0 : i32
    %c0_i32_0 = arith.constant 0 : i32
    %c0_i32_1 = arith.constant 0 : i32
    return %c0_i32, %c0_i32_0 : i32, i32
  }
  func.func @transform_3(%arg0: i32) -> (i32, i32) {
    %c0_i32 = arith.constant 0 : i32
    %c0_i32_0 = arith.constant 0 : i32
    %c0_i32_1 = arith.constant 0 : i32
    return %c0_i32, %c0_i32_0 : i32, i32
  }
  func.func @transform_4(%arg0: i32) -> (i32, i32) {
    %c0_i32 = arith.constant 0 : i32
    %c0_i32_0 = arith.constant 0 : i32
    %c0_i32_1 = arith.constant 0 : i32
    return %c0_i32, %c0_i32_0 : i32, i32
  }
  func.func @transform_5(%arg0: i32) -> (i32, i32) {
    %c0_i32 = arith.constant 0 : i32
    %c0_i32_0 = arith.constant 0 : i32
    %c0_i32_1 = arith.constant 0 : i32
    return %c0_i32, %c0_i32_0 : i32, i32
  }
  func.func @transform_6(%arg0: i32) -> (i32, i32) {
    %c0_i32 = arith.constant 0 : i32
    %c0_i32_0 = arith.constant 0 : i32
    %c0_i32_1 = arith.constant 0 : i32
    return %c0_i32, %c0_i32_0 : i32, i32
  }
  func.func @transform_7(%arg0: i32) -> (i32, i32) {
    %c0_i32 = arith.constant 0 : i32
    %c0_i32_0 = arith.constant 0 : i32
    return %arg0, %c0_i32 : i32, i32
  }
}

</mosaic_0001>

<bundles_post_ra>
// kernel: tpu_custom_call.1
= control target key start
LH: loop header
LB: loop body
LE: loop exit
PB: predicated region body
PF: predicated region fallthrough
CT: control target
= control target key end

     0   :  { %12 = vsyncpa [#allocation3], 0  ;;  %s2355_s0 = inlined_call_operand.hbm [shape: f32[8,1280], index: 0, kind: input, shape index: {}]   ;;  %s2356_s1 = inlined_call_operand.hbm [shape: bf16[1280,256], index: 1, kind: input, shape index: {}]   ;;  %s2357_s2 = inlined_call_operand.vmem [shape: f32[1,256], index: 2, kind: input, shape index: {}]   ;;  %s2358_s3 = inlined_call_operand.hbm [shape: bf16[256,128], index: 3, kind: input, shape index: {}]   ;;  %s2359_s4 = inlined_call_operand.vmem [shape: f32[1,128], index: 4, kind: input, shape index: {}]   ;;  %s2360_s5 = inlined_call_operand.hbm [shape: bf16[128,128], index: 5, kind: input, shape index: {}]   ;;  %s2361_s6 = inlined_call_operand.vmem [shape: f32[1,128], index: 6, kind: input, shape index: {}]   ;;  %s2362_s7 = inlined_call_operand.hbm [shape: bf16[8,128], index: 7, kind: output, shape index: {}]  }
   0x1   :  { %13 = vsyncpa [#allocation6], 0 }
   0x2   :  { %14 = vsyncpa [#allocation9], 0 }
   0x3   :  { %15 = vsyncpa [#allocation4], 0  ;;  %s2235_s24 = smov [#allocation5]   ;;  %s2117_s28 = scalar_lea.hbm %s2356_s1, 20480 }
   0x4   :  { %s31_s25 = sshll.u32 %s2235_s24, 4  ;;  %p2118_p0 = scmp.ne.s32.totalorder %s2356_s1, %s2117_s28  ;;  %s32_s25 = int_to_ptr.vmem [resolvable:$true] %s31_s25 }
   0x5   :  { %p2121_p1 = scmp.lt.u32.totalorder %s2117_s28, %s2356_s1 }
   0x7   :  { %p2123_p2 = pnand %p2121_p1, %p2118_p0 }
   0x9   :  { %2126 = shalt.err (!%p2123_p2)
}
   0xa   :  { %s2127_s10 = scalar_lea.vmem %s32_s25, 20480  ;;  %p2132_p4 = scmp.lt.s32.totalorder %s32_s25, %s32_s25 }
   0xb   :  { %p2128_p3 = scmp.ne.s32.totalorder %s32_s25, %s2127_s10  ;;  %p2133_p5 = scmp.lt.s32.totalorder %s2127_s10, %s2127_s10 }
   0xd   :  { %p2134_p6 = por %p2133_p5, %p2132_p4 }
   0xf   :  { %p2135_p7 = pnand %p2134_p6, %p2128_p3 }
  0x11   :  { %2138 = shalt.err (!%p2135_p7)
}
  0x12   :  { %s2236_s11 = smov 128   ;;  %s2237_s12 = smov 8  }
  0x13   :  { %37 = dma.hbm_to_vmem [thread:$0]  %s2356_s1, 20480, %s32_s25, [#allocation6], %s2236_s11, %s2236_s11, %s2237_s12  }
  0x14   :  { %s2238_s15 = smov [#allocation2]   ;;  %s2239_s17 = smov [#allocation7]  }
  0x15   :  { %s22_s16 = sshll.u32 %s2238_s15, 4  ;;  %s45_s18 = sshll.u32 %s2239_s17, 4  ;;  %s23_s16 = int_to_ptr.vmem [resolvable:$true] %s22_s16  ;;  %s46_s18 = int_to_ptr.vmem [resolvable:$true] %s45_s18 }
  0x16   :  { %s2139_s21 = scalar_lea.hbm %s2355_s0, 1280 }
  0x17   :  { %p2140_p8 = scmp.ne.s32.totalorder %s2355_s0, %s2139_s21  ;;  %p2143_p9 = scmp.lt.u32.totalorder %s2139_s21, %s2355_s0 }
  0x19   :  { %p2145_p10 = pnand %p2143_p9, %p2140_p8 }
  0x1b   :  { %2148 = shalt.err (!%p2145_p10)
}
  0x1c   :  { %s2149_s1 = scalar_lea.vmem %s23_s16, 1280  ;;  %p2154_p12 = scmp.lt.s32.totalorder %s23_s16, %s23_s16 }
  0x1d   :  { %p2150_p11 = scmp.ne.s32.totalorder %s23_s16, %s2149_s1  ;;  %p2155_p13 = scmp.lt.s32.totalorder %s2149_s1, %s2149_s1 }
  0x1f   :  { %p2156_p0 = por %p2155_p13, %p2154_p12 }
  0x21   :  { %p2157_p1 = pnand %p2156_p0, %p2150_p11 }
  0x23   :  { %2160 = shalt.err (!%p2157_p1)
}
  0x24   :  { %25 = dma.hbm_to_vmem [thread:$0]  %s2355_s0, 1280, %s23_s16, [#allocation3]  }
  0x25   :  { %s2161_s30 = scalar_lea.hbm %s2358_s3, 2048 }
  0x26   :  { %p2162_p2 = scmp.ne.s32.totalorder %s2358_s3, %s2161_s30  ;;  %p2165_p3 = scmp.lt.u32.totalorder %s2161_s30, %s2358_s3 }
  0x28   :  { %p2167_p4 = pnand %p2165_p3, %p2162_p2 }
  0x2a   :  { %2170 = shalt.err (!%p2167_p4)
}
  0x2b   :  { %s2171_s12 = scalar_lea.vmem %s46_s18, 2048  ;;  %p2176_p6 = scmp.lt.s32.totalorder %s46_s18, %s46_s18 }
  0x2c   :  { %p2172_p5 = scmp.ne.s32.totalorder %s46_s18, %s2171_s12  ;;  %p2177_p7 = scmp.lt.s32.totalorder %s2171_s12, %s2171_s12 }
  0x2e   :  { %p2178_p8 = por %p2177_p7, %p2176_p6 }
  0x30   :  { %p2179_p9 = pnand %p2178_p8, %p2172_p5 }
  0x32   :  { %2182 = shalt.err (!%p2179_p9)
}
  0x33   :  { %s2240_s0 = smov 64   ;;  %s2241_s13 = smov 4  }
  0x34   :  { %51 = dma.hbm_to_vmem [thread:$0]  %s2358_s3, 2048, %s46_s18, [#allocation6], %s2240_s0, %s2240_s0, %s2241_s13  }
  0x35   :  { %s2242_s16 = smov [#allocation8]   ;;  %s2183_s21 = scalar_lea.hbm %s2360_s5, 1024 }
  0x36   :  { %s59_s17 = sshll.u32 %s2242_s16, 4  ;;  %p2184_p10 = scmp.ne.s32.totalorder %s2360_s5, %s2183_s21  ;;  %s60_s17 = int_to_ptr.vmem [resolvable:$true] %s59_s17 }
  0x37   :  { %p2187_p11 = scmp.lt.u32.totalorder %s2183_s21, %s2360_s5 }
  0x39   :  { %p2189_p12 = pnand %p2187_p11, %p2184_p10 }
  0x3b   :  { %2192 = shalt.err (!%p2189_p12)
}
  0x3c   :  { %s2193_s1 = scalar_lea.vmem %s60_s17, 1024  ;;  %p2198_p0 = scmp.lt.s32.totalorder %s60_s17, %s60_s17 }
  0x3d   :  { %p2194_p13 = scmp.ne.s32.totalorder %s60_s17, %s2193_s1  ;;  %p2199_p1 = scmp.lt.s32.totalorder %s2193_s1, %s2193_s1 }
  0x3f   :  { %p2200_p2 = por %p2199_p1, %p2198_p0 }
  0x41   :  { %p2201_p3 = pnand %p2200_p2, %p2194_p13 }
  0x43   :  { %2204 = shalt.err (!%p2201_p3)
}
  0x44   :  { %65 = dma.hbm_to_vmem [thread:$0]  %s2360_s5, 1024, %s60_s17, [#allocation9], %s2240_s0, %s2240_s0, %s2241_s13  }
  0x45   :  { %2227 = dma.done.wait [#allocation3], 1280  }
  0x46   :  { %2228 = vsyncadd [#allocation3], 4294966016 }
  0x47   :  { %2229 = dma.done.wait [#allocation6], 22528  }
  0x48   :  { %2230 = vsyncadd [#allocation6], 4294944768 }
  0x49   :  { %2231 = dma.done.wait [#allocation9], 1024  }
  0x4a   :  { %2232 = vsyncadd [#allocation9], 4294966272  ;;  %v1853_v0 = vld [vmem:[#allocation5 + $0x4] ss:$8 sps:$4 sm:$0xff]   ;;  %v1857_v2 = vld [vmem:[#allocation5] ss:$8 sps:$4 sm:$0xff]  }
  0x4b   :  { %v1855_v1 = vld [vmem:[#allocation5 + $0x204] ss:$8 sps:$4 sm:$0xff]   ;;  %1073 = vmatprep.subr.bf16.mxu1 %v1853_v0  ;;  %v1858_v3 = vld [vmem:[#allocation5 + $0x200] ss:$8 sps:$4 sm:$0xff]   ;;  %v1859_v4 = vld [vmem:[#allocation5 + $0x14] ss:$8 sps:$4 sm:$0xff]  }
  0x4c   :  { %1155 = vmatprep.subr.bf16.mxu0 %v1855_v1  ;;  %1074 = vmatpush1.bf16.msra.mxu1 %v1857_v2  ;;  %v1861_v5 = vld [vmem:[#allocation5 + $0x214] ss:$8 sps:$4 sm:$0xff]   ;;  %v1863_v6 = vld [vmem:[#allocation5 + $0x10] ss:$8 sps:$4 sm:$0xff]   ;;  %v1865_v8 = vld [vmem:[#allocation5 + $0x24] ss:$8 sps:$4 sm:$0xff]  }
  0x4d   :  { %1156 = vmatpush1.bf16.msra.mxu0 %v1858_v3  ;;  %1075 = vmatprep.subr.bf16.mxu1 %v1859_v4  ;;  %v1864_v7 = vld [vmem:[#allocation5 + $0x210] ss:$8 sps:$4 sm:$0xff]   ;;  %v1867_v9 = vld [vmem:[#allocation5 + $0x224] ss:$8 sps:$4 sm:$0xff]   ;;  %v1869_v10 = vld [vmem:[#allocation5 + $0x20] ss:$8 sps:$4 sm:$0xff]  }
  0x4e   :  { %1157 = vmatprep.subr.bf16.mxu0 %v1861_v5  ;;  %v1870_v11 = vld [vmem:[#allocation5 + $0x220] ss:$8 sps:$4 sm:$0xff]   ;;  %v1871_v12 = vld [vmem:[#allocation5 + $0x34] ss:$8 sps:$4 sm:$0xff]   ;;  %v1875_v14 = vld [vmem:[#allocation5 + $0x30] ss:$8 sps:$4 sm:$0xff]  }
  0x4f   :  { %v1873_v13 = vld [vmem:[#allocation5 + $0x234] ss:$8 sps:$4 sm:$0xff]   ;;  %v1876_v15 = vld [vmem:[#allocation5 + $0x230] ss:$8 sps:$4 sm:$0xff]   ;;  %v1877_v16 = vld [vmem:[#allocation5 + $0x44] ss:$8 sps:$4 sm:$0xff]  }
  0x50   :  { %1076 = vmatpush1.bf16.msra.mxu1 %v1863_v6  ;;  %v1879_v17 = vld [vmem:[#allocation5 + $0x244] ss:$8 sps:$4 sm:$0xff]   ;;  %v1881_v18 = vld [vmem:[#allocation5 + $0x40] ss:$8 sps:$4 sm:$0xff]   ;;  %v1883_v20 = vld [vmem:[#allocation5 + $0x54] ss:$8 sps:$4 sm:$0xff]  }
  0x51   :  { %1158 = vmatpush1.bf16.msra.mxu0 %v1864_v7  ;;  %1077 = vmatprep.subr.bf16.mxu1 %v1865_v8  ;;  %v1882_v19 = vld [vmem:[#allocation5 + $0x240] ss:$8 sps:$4 sm:$0xff]   ;;  %v1885_v21 = vld [vmem:[#allocation5 + $0x254] ss:$8 sps:$4 sm:$0xff]   ;;  %v1887_v22 = vld [vmem:[#allocation5 + $0x50] ss:$8 sps:$4 sm:$0xff]  }
  0x52   :  { %1159 = vmatprep.subr.bf16.mxu0 %v1867_v9  ;;  %v1888_v23 = vld [vmem:[#allocation5 + $0x250] ss:$8 sps:$4 sm:$0xff]   ;;  %v1889_v24 = vld [vmem:[#allocation5 + $0x64] ss:$8 sps:$4 sm:$0xff]   ;;  %v1893_v26 = vld [vmem:[#allocation5 + $0x60] ss:$8 sps:$4 sm:$0xff]  }
  0x53   :  { %v1891_v25 = vld [vmem:[#allocation5 + $0x264] ss:$8 sps:$4 sm:$0xff]   ;;  %v1894_v27 = vld [vmem:[#allocation5 + $0x260] ss:$8 sps:$4 sm:$0xff]   ;;  %v1895_v28 = vld [vmem:[#allocation5 + $0x74] ss:$8 sps:$4 sm:$0xff]  }
  0x54   :  { %1078 = vmatpush1.bf16.msra.mxu1 %v1869_v10  ;;  %v1897_v29 = vld [vmem:[#allocation5 + $0x274] ss:$8 sps:$4 sm:$0xff]   ;;  %v1899_v30 = vld [vmem:[#allocation5 + $0x70] ss:$8 sps:$4 sm:$0xff]   ;;  %v1901_v32 = vld [vmem:[#allocation5 + $0x84] ss:$8 sps:$4 sm:$0xff]  }
  0x55   :  { %1160 = vmatpush1.bf16.msra.mxu0 %v1870_v11  ;;  %1079 = vmatprep.subr.bf16.mxu1 %v1871_v12  ;;  %v1900_v31 = vld [vmem:[#allocation5 + $0x270] ss:$8 sps:$4 sm:$0xff]   ;;  %v1903_v33 = vld [vmem:[#allocation5 + $0x284] ss:$8 sps:$4 sm:$0xff]   ;;  %v1905_v34 = vld [vmem:[#allocation5 + $0x80] ss:$8 sps:$4 sm:$0xff]  }
  0x56   :  { %1161 = vmatprep.subr.bf16.mxu0 %v1873_v13  ;;  %v1906_v35 = vld [vmem:[#allocation5 + $0x280] ss:$8 sps:$4 sm:$0xff]   ;;  %v1907_v36 = vld [vmem:[#allocation5 + $0x94] ss:$8 sps:$4 sm:$0xff]   ;;  %v1911_v38 = vld [vmem:[#allocation5 + $0x90] ss:$8 sps:$4 sm:$0xff]  }
  0x57   :  { %v1909_v37 = vld [vmem:[#allocation5 + $0x294] ss:$8 sps:$4 sm:$0xff]   ;;  %v1912_v39 = vld [vmem:[#allocation5 + $0x290] ss:$8 sps:$4 sm:$0xff]   ;;  %v1913_v40 = vld [vmem:[#allocation5 + $0xa4] ss:$8 sps:$4 sm:$0xff]  }
  0x58   :  { %1080 = vmatpush1.bf16.msra.mxu1 %v1875_v14  ;;  %v1915_v41 = vld [vmem:[#allocation5 + $0x2a4] ss:$8 sps:$4 sm:$0xff]   ;;  %v1917_v42 = vld [vmem:[#allocation5 + $0xa0] ss:$8 sps:$4 sm:$0xff]   ;;  %v1919_v44 = vld [vmem:[#allocation5 + $0xb4] ss:$8 sps:$4 sm:$0xff]  }
  0x59   :  { %1162 = vmatpush1.bf16.msra.mxu0 %v1876_v15  ;;  %1081 = vmatprep.subr.bf16.mxu1 %v1877_v16  ;;  %v1918_v43 = vld [vmem:[#allocation5 + $0x2a0] ss:$8 sps:$4 sm:$0xff]   ;;  %v1921_v45 = vld [vmem:[#allocation5 + $0x2b4] ss:$8 sps:$4 sm:$0xff]   ;;  %v1923_v47 = vld [vmem:[#allocation5 + $0xb0] ss:$8 sps:$4 sm:$0xff]  }
  0x5a   :  { %1163 = vmatprep.subr.bf16.mxu0 %v1879_v17  ;;  %v82_v46 = vld [vmem:[#allocation2 + $0x8] sm:$0xff]  ;;  %v1925_v51 = vld [vmem:[#allocation5 + $0xc4] ss:$8 sps:$4 sm:$0xff]   ;;  %v1929_v54 = vld [vmem:[#allocation5 + $0xc0] ss:$8 sps:$4 sm:$0xff]   ;;  %vm2244_vm0 = vmmov 0  }
  0x5b   :  { %v92_v48 = vpack.c.bf16 %v82_v46, %v82_v46  ;;  %v1924_v49 = vld [vmem:[#allocation5 + $0x2b0] ss:$8 sps:$4 sm:$0xff]   ;;  %v1927_v52 = vld [vmem:[#allocation5 + $0x2c4] ss:$8 sps:$4 sm:$0xff]   ;;  %v1930_v55 = vld [vmem:[#allocation5 + $0x2c0] ss:$8 sps:$4 sm:$0xff]  }
  0x5c   :  { %1082 = vmatpush1.bf16.msra.mxu1 %v1881_v18  ;;  %v86_v50 = vld [vmem:[#allocation2 + $0x28] sm:$0xff]  ;;  %v1937_v60 = vld [vmem:[#allocation5 + $0xe4] ss:$8 sps:$4 sm:$0xff]   ;;  %v1941_v62 = vld [vmem:[#allocation5 + $0xe0] ss:$8 sps:$4 sm:$0xff]   ;;  %s2245_s30 = smov [#allocation10]  }
  0x5d   :  { %1164 = vmatpush1.bf16.msra.mxu0 %v1882_v19  ;;  %1083 = vmatprep.subr.bf16.mxu1 %v1883_v20  ;;  %v96_v53 = vpack.c.bf16 %v86_v50, %v86_v50  ;;  %v1931_v56 = vld [vmem:[#allocation5 + $0xd4] ss:$8 sps:$4 sm:$0xff]   ;;  %v1935_v58 = vld [vmem:[#allocation5 + $0xd0] ss:$8 sps:$4 sm:$0xff]   ;;  %v1939_v61 = vld [vmem:[#allocation5 + $0x2e4] ss:$8 sps:$4 sm:$0xff]  }
  0x5e   :  { %1165 = vmatprep.subr.bf16.mxu0 %v1885_v21  ;;  %1105 = vmatprep.mubr.bf16.mxu1 %v92_v48  ;;  %v1933_v57 = vld [vmem:[#allocation5 + $0x2d4] ss:$8 sps:$4 sm:$0xff]   ;;  %v1936_v59 = vld [vmem:[#allocation5 + $0x2d0] ss:$8 sps:$4 sm:$0xff]   ;;  %v1942_v63 = vld [vmem:[#allocation5 + $0x2e0] ss:$8 sps:$4 sm:$0xff]  }
  0x5f   :  { %1187 = vmatprep.mubr.bf16.mxu0 %v96_v53  ;;  %v1943_v0 = vld [vmem:[#allocation5 + $0xf4] ss:$8 sps:$4 sm:$0xff]   ;;  %v1947_v2 = vld [vmem:[#allocation5 + $0xf0] ss:$8 sps:$4 sm:$0xff]   ;;  %v1951_v4 = vld [vmem:[#allocation5 + $0x104] ss:$8 sps:$4 sm:$0xff]  }
  0x60   :  { %1084 = vmatpush1.bf16.msra.mxu1 %v1887_v22  ;;  %v1945_v1 = vld [vmem:[#allocation5 + $0x2f4] ss:$8 sps:$4 sm:$0xff]   ;;  %v1948_v3 = vld [vmem:[#allocation5 + $0x2f0] ss:$8 sps:$4 sm:$0xff]   ;;  %v1954_v7 = vld [vmem:[#allocation5 + $0x304] ss:$8 sps:$4 sm:$0xff]  }
  0x61   :  { %1166 = vmatpush1.bf16.msra.mxu0 %v1888_v23  ;;  %1085 = vmatprep.subr.bf16.mxu1 %v1889_v24  ;;  %v81_v5 = vld [vmem:[#allocation2] sm:$0xff]  ;;  %v1949_v8 = vld [vmem:[#allocation5 + $0x100] ss:$8 sps:$4 sm:$0xff]   ;;  %v1963_v16 = vld [vmem:[#allocation5 + $0x124] ss:$8 sps:$4 sm:$0xff]   ;;  %s1578_s8 = sshll.u32 %s2245_s30, 4  ;;  %s1579_s8 = int_to_ptr.vmem [resolvable:$true] %s1578_s8 }
  0x62   :  { %1167 = vmatprep.subr.bf16.mxu0 %v1891_v25  ;;  %v85_v6 = vld [vmem:[#allocation2 + $0x20] sm:$0xff]  ;;  %v1952_v9 = vld [vmem:[#allocation5 + $0x300] ss:$8 sps:$4 sm:$0xff]   ;;  %v91_v10 = vpack.c.bf16 %v81_v5, %v81_v5  ;;  %v1966_v17 = vld [vmem:[#allocation5 + $0x324] ss:$8 sps:$4 sm:$0xff]   ;;  %p2210_p5 = scmp.lt.s32.totalorder %s1579_s8, %s1579_s8 }
  0x63   :  { %v95_v11 = vpack.c.bf16 %v85_v6, %v85_v6  ;;  %v1957_v12 = vld [vmem:[#allocation5 + $0x114] ss:$8 sps:$4 sm:$0xff]   ;;  %v1955_v14 = vld [vmem:[#allocation5 + $0x110] ss:$8 sps:$4 sm:$0xff]   ;;  %v1961_v18 = vld [vmem:[#allocation5 + $0x120] ss:$8 sps:$4 sm:$0xff]  }
  0x64   :  { %1086 = vmatpush1.bf16.msra.mxu1 %v1893_v26  ;;  %v1960_v13 = vld [vmem:[#allocation5 + $0x314] ss:$8 sps:$4 sm:$0xff]   ;;  %v1958_v15 = vld [vmem:[#allocation5 + $0x310] ss:$8 sps:$4 sm:$0xff]   ;;  %v1964_v19 = vld [vmem:[#allocation5 + $0x320] ss:$8 sps:$4 sm:$0xff]  }
  0x65   :  { %1168 = vmatpush1.bf16.msra.mxu0 %v1894_v27  ;;  %1087 = vmatprep.subr.bf16.mxu1 %v1895_v28  ;;  %v1969_v20 = vld [vmem:[#allocation5 + $0x134] ss:$8 sps:$4 sm:$0xff]   ;;  %v1967_v22 = vld [vmem:[#allocation5 + $0x130] ss:$8 sps:$4 sm:$0xff]   ;;  %v1975_v24 = vld [vmem:[#allocation5 + $0x144] ss:$8 sps:$4 sm:$0xff]  }
  0x66   :  { %1169 = vmatprep.subr.bf16.mxu0 %v1897_v29  ;;  %v1972_v21 = vld [vmem:[#allocation5 + $0x334] ss:$8 sps:$4 sm:$0xff]   ;;  %v1970_v23 = vld [vmem:[#allocation5 + $0x330] ss:$8 sps:$4 sm:$0xff]   ;;  %v1978_v25 = vld [vmem:[#allocation5 + $0x344] ss:$8 sps:$4 sm:$0xff]  }
  0x67   :  { %v1973_v26 = vld [vmem:[#allocation5 + $0x140] ss:$8 sps:$4 sm:$0xff]   ;;  %v1981_v28 = vld [vmem:[#allocation5 + $0x154] ss:$8 sps:$4 sm:$0xff]   ;;  %v2003_v50 = vld [vmem:[#allocation5 + $0x190] ss:$8 sps:$4 sm:$0xff]  }
  0x68   :  { %1088 = vmatpush1.bf16.msra.mxu1 %v1899_v30  ;;  %v1976_v27 = vld [vmem:[#allocation5 + $0x340] ss:$8 sps:$4 sm:$0xff]   ;;  %v1984_v29 = vld [vmem:[#allocation5 + $0x354] ss:$8 sps:$4 sm:$0xff]   ;;  %v1979_v30 = vld [vmem:[#allocation5 + $0x150] ss:$8 sps:$4 sm:$0xff]  }
  0x69   :  { %1170 = vmatpush1.bf16.msra.mxu0 %v1900_v31  ;;  %1089 = vmatprep.subr.bf16.mxu1 %v1901_v32  ;;  %v1982_v31 = vld [vmem:[#allocation5 + $0x350] ss:$8 sps:$4 sm:$0xff]   ;;  %v1987_v32 = vld [vmem:[#allocation5 + $0x164] ss:$8 sps:$4 sm:$0xff]   ;;  %v1997_v46 = vld [vmem:[#allocation5 + $0x180] ss:$8 sps:$4 sm:$0xff]  }
  0x6a   :  { %1171 = vmatprep.subr.bf16.mxu0 %v1903_v33  ;;  %v1990_v33 = vld [vmem:[#allocation5 + $0x364] ss:$8 sps:$4 sm:$0xff]   ;;  %v2005_v48 = vld [vmem:[#allocation5 + $0x194] ss:$8 sps:$4 sm:$0xff]   ;;  %v2033_v6 = vld [vmem:[#allocation5 + $0x1e0] ss:$8 sps:$4 sm:$0xff]  }
  0x6b   :  { %v2014_v53 = vld [vmem:[#allocation5 + $0x3a4] ss:$8 sps:$4 sm:$0xff]  }
  0x6c   :  { %1090 = vmatpush1.bf16.msra.mxu1 %v1905_v34  ;;  %v84_v34 = vld [vmem:[#allocation2 + $0x18] sm:$0xff] }
  0x6d   :  { %1172 = vmatpush1.bf16.msra.mxu0 %v1906_v35  ;;  %1091 = vmatprep.subr.bf16.mxu1 %v1907_v36  ;;  %v1985_v35 = vld [vmem:[#allocation5 + $0x160] ss:$8 sps:$4 sm:$0xff]   ;;  %v94_v36 = vpack.c.bf16 %v84_v34, %v84_v34  ;;  %v2038_v5 = vld [vmem:[#allocation5 + $0x3e4] ss:$8 sps:$4 sm:$0xff]  }
  0x6e   :  { %1173 = vmatprep.subr.bf16.mxu0 %v1909_v37  ;;  %v88_v37 = vld [vmem:[#allocation2 + $0x38] sm:$0xff] }
  0x6f   :  { %v2071_v34 = vld [vmem:[#allocation5 + $0x484] ss:$8 sps:$4 sm:$0xff]  }
  0x70   :  { %1092 = vmatpush1.bf16.msra.mxu1 %v1911_v38  ;;  %v1988_v38 = vld [vmem:[#allocation5 + $0x360] ss:$8 sps:$4 sm:$0xff]  }
  0x71   :  { %1174 = vmatpush1.bf16.msra.mxu0 %v1912_v39  ;;  %1093 = vmatprep.subr.bf16.mxu1 %v1913_v40  ;;  %v1993_v39 = vld [vmem:[#allocation5 + $0x174] ss:$8 sps:$4 sm:$0xff]   ;;  %v98_v40 = vpack.c.bf16 %v88_v37, %v88_v37  ;;  %v2072_v37 = vld [vmem:[#allocation5 + $0x490] ss:$8 sps:$4 sm:$0xff]  }
  0x72   :  { %1175 = vmatprep.subr.bf16.mxu0 %v1915_v41  ;;  %v1996_v41 = vld [vmem:[#allocation5 + $0x374] ss:$8 sps:$4 sm:$0xff]  }
  0x74   :  { %1094 = vmatpush1.bf16.msra.mxu1 %v1917_v42  ;;  %v1991_v42 = vld [vmem:[#allocation5 + $0x170] ss:$8 sps:$4 sm:$0xff]  }
  0x75   :  { %1176 = vmatpush1.bf16.msra.mxu0 %v1918_v43  ;;  %1095 = vmatprep.subr.bf16.mxu1 %v1919_v44  ;;  %v1994_v43 = vld [vmem:[#allocation5 + $0x370] ss:$8 sps:$4 sm:$0xff]   ;;  %v1999_v44 = vld [vmem:[#allocation5 + $0x184] ss:$8 sps:$4 sm:$0xff]  }
  0x76   :  { %1177 = vmatprep.subr.bf16.mxu0 %v1921_v45  ;;  %v2002_v45 = vld [vmem:[#allocation5 + $0x384] ss:$8 sps:$4 sm:$0xff]  }
  0x78   :  { %1096 = vmatpush1.bf16.msra.mxu1 %v1923_v47  ;;  %v2000_v47 = vld [vmem:[#allocation5 + $0x380] ss:$8 sps:$4 sm:$0xff]  }
  0x79   :  { %1178 = vmatpush1.bf16.msra.mxu0 %v1924_v49  ;;  %1097 = vmatprep.subr.bf16.mxu1 %v1925_v51  ;;  %v2008_v49 = vld [vmem:[#allocation5 + $0x394] ss:$8 sps:$4 sm:$0xff]   ;;  %v2006_v51 = vld [vmem:[#allocation5 + $0x390] ss:$8 sps:$4 sm:$0xff]  }
  0x7a   :  { %1179 = vmatprep.subr.bf16.mxu0 %v1927_v52  ;;  %v2011_v52 = vld [vmem:[#allocation5 + $0x1a4] ss:$8 sps:$4 sm:$0xff]  }
  0x7c   :  { %1098 = vmatpush1.bf16.msra.mxu1 %v1929_v54  ;;  %v2009_v54 = vld [vmem:[#allocation5 + $0x1a0] ss:$8 sps:$4 sm:$0xff]  }
  0x7d   :  { %1180 = vmatpush1.bf16.msra.mxu0 %v1930_v55  ;;  %1099 = vmatprep.subr.bf16.mxu1 %v1931_v56  ;;  %v2012_v55 = vld [vmem:[#allocation5 + $0x3a0] ss:$8 sps:$4 sm:$0xff]   ;;  %v2017_v56 = vld [vmem:[#allocation5 + $0x1b4] ss:$8 sps:$4 sm:$0xff]  }
  0x7e   :  { %1181 = vmatprep.subr.bf16.mxu0 %v1933_v57  ;;  %v2020_v57 = vld [vmem:[#allocation5 + $0x3b4] ss:$8 sps:$4 sm:$0xff]  }
  0x80   :  { %1100 = vmatpush1.bf16.msra.mxu1 %v1935_v58  ;;  %v2015_v58 = vld [vmem:[#allocation5 + $0x1b0] ss:$8 sps:$4 sm:$0xff]  }
  0x81   :  { %1182 = vmatpush1.bf16.msra.mxu0 %v1936_v59  ;;  %1101 = vmatprep.subr.bf16.mxu1 %v1937_v60  ;;  %v2018_v59 = vld [vmem:[#allocation5 + $0x3b0] ss:$8 sps:$4 sm:$0xff]   ;;  %v2023_v60 = vld [vmem:[#allocation5 + $0x1c4] ss:$8 sps:$4 sm:$0xff]  }
  0x82   :  { %1183 = vmatprep.subr.bf16.mxu0 %v1939_v61  ;;  %v2026_v61 = vld [vmem:[#allocation5 + $0x3c4] ss:$8 sps:$4 sm:$0xff]  }
  0x84   :  { %1102 = vmatpush1.bf16.msra.mxu1 %v1941_v62  ;;  %v2021_v62 = vld [vmem:[#allocation5 + $0x1c0] ss:$8 sps:$4 sm:$0xff]  }
  0x85   :  { %1184 = vmatpush1.bf16.msra.mxu0 %v1942_v63  ;;  %1103 = vmatprep.subr.bf16.mxu1 %v1943_v0  ;;  %v2024_v63 = vld [vmem:[#allocation5 + $0x3c0] ss:$8 sps:$4 sm:$0xff]   ;;  %v2029_v0 = vld [vmem:[#allocation5 + $0x1d4] ss:$8 sps:$4 sm:$0xff]  }
  0x86   :  { %1185 = vmatprep.subr.bf16.mxu0 %v1945_v1  ;;  %v2032_v1 = vld [vmem:[#allocation5 + $0x3d4] ss:$8 sps:$4 sm:$0xff]  }
  0x88   :  { %1104 = vmatpush1.bf16.msra.mxu1 %v1947_v2  ;;  %v2027_v2 = vld [vmem:[#allocation5 + $0x1d0] ss:$8 sps:$4 sm:$0xff]  }
  0x89   :  { %1186 = vmatpush1.bf16.msra.mxu0 %v1948_v3  ;;  %1114 = vmatprep.subr.bf16.mxu1 %v1951_v4  ;;  %v2030_v3 = vld [vmem:[#allocation5 + $0x3d0] ss:$8 sps:$4 sm:$0xff]   ;;  %v2035_v4 = vld [vmem:[#allocation5 + $0x1e4] ss:$8 sps:$4 sm:$0xff]  }
  0x8a   :  { %1196 = vmatprep.subr.bf16.mxu0 %v1954_v7  ;;  %v2036_v7 = vld [vmem:[#allocation5 + $0x3e0] ss:$8 sps:$4 sm:$0xff]  }
  0x8b   :  { %1106 = vmatmul.mubr.bf16.vlgmr.msra.gmra.mrb[0].mxu1 %v91_v10  ;;  %v2039_v10 = vld [vmem:[#allocation5 + $0x1f0] ss:$8 sps:$4 sm:$0xff]  }
  0x8c   :  { %1188 = vmatmul.mubr.bf16.vlgmr.msra.gmra.mrb[0].mxu0 %v95_v11  ;;  %1115 = vmatpush1.bf16.msra.mxu1 %v1949_v8  ;;  %v2041_v8 = vld [vmem:[#allocation5 + $0x1f4] ss:$8 sps:$4 sm:$0xff]   ;;  %v2042_v11 = vld [vmem:[#allocation5 + $0x3f0] ss:$8 sps:$4 sm:$0xff]  }
  0x8d   :  { %1197 = vmatpush1.bf16.msra.mxu0 %v1952_v9  ;;  %1116 = vmatprep.subr.bf16.mxu1 %v1957_v12  ;;  %v2044_v9 = vld [vmem:[#allocation5 + $0x3f4] ss:$8 sps:$4 sm:$0xff]   ;;  %v83_v12 = vld [vmem:[#allocation2 + $0x10] sm:$0xff] }
  0x8e   :  { %1198 = vmatprep.subr.bf16.mxu0 %v1960_v13  ;;  %1146 = vmatprep.mubr.bf16.mxu1 %v94_v36  ;;  %v87_v13 = vld [vmem:[#allocation2 + $0x30] sm:$0xff]  ;;  %v2074_v36 = vld [vmem:[#allocation5 + $0x494] ss:$8 sps:$4 sm:$0xff]  }
  0x8f   :  { %1228 = vmatprep.mubr.bf16.mxu0 %v98_v40  ;;  %v2080_v40 = vld [vmem:[#allocation5 + $0x4b4] ss:$8 sps:$4 sm:$0xff]  }
  0x90   :  { %1117 = vmatpush1.bf16.msra.mxu1 %v1955_v14  ;;  %v2047_v14 = vld [vmem:[#allocation5 + $0x404] ss:$8 sps:$4 sm:$0xff]  }
  0x91   :  { %1199 = vmatpush1.bf16.msra.mxu0 %v1958_v15  ;;  %1118 = vmatprep.subr.bf16.mxu1 %v1963_v16  ;;  %v90_v15 = vld [vmem:[#allocation2 + $0x48] sm:$0xff]  ;;  %v93_v16 = vpack.c.bf16 %v83_v12, %v83_v12  ;;  %v261_v12 = vld [vmem:[%s2357_s2] sm:$0x3] }
  0x92   :  { %1200 = vmatprep.subr.bf16.mxu0 %v1966_v17  ;;  %v97_v17 = vpack.c.bf16 %v87_v13, %v87_v13 }
  0x94   :  { %1119 = vmatpush1.bf16.msra.mxu1 %v1961_v18  ;;  %v2045_v18 = vld [vmem:[#allocation5 + $0x400] ss:$8 sps:$4 sm:$0xff]  }
  0x95   :  { %1201 = vmatpush1.bf16.msra.mxu0 %v1964_v19  ;;  %1120 = vmatprep.subr.bf16.mxu1 %v1969_v20  ;;  %v100_v19 = vpack.c.bf16 %v90_v15, %v90_v15  ;;  %v2050_v20 = vld [vmem:[#allocation5 + $0x414] ss:$8 sps:$4 sm:$0xff]  }
  0x96   :  { %1202 = vmatprep.subr.bf16.mxu0 %v1972_v21  ;;  %v2048_v21 = vld [vmem:[#allocation5 + $0x410] ss:$8 sps:$4 sm:$0xff]  }
  0x98   :  { %1121 = vmatpush1.bf16.msra.mxu1 %v1967_v22  ;;  %v2053_v22 = vld [vmem:[#allocation5 + $0x424] ss:$8 sps:$4 sm:$0xff]  }
  0x99   :  { %1203 = vmatpush1.bf16.msra.mxu0 %v1970_v23  ;;  %1122 = vmatprep.subr.bf16.mxu1 %v1975_v24  ;;  %v2051_v23 = vld [vmem:[#allocation5 + $0x420] ss:$8 sps:$4 sm:$0xff]   ;;  %v2056_v24 = vld [vmem:[#allocation5 + $0x434] ss:$8 sps:$4 sm:$0xff]  }
  0x9a   :  { %1204 = vmatprep.subr.bf16.mxu0 %v1978_v25  ;;  %v2054_v25 = vld [vmem:[#allocation5 + $0x430] ss:$8 sps:$4 sm:$0xff]  }
  0x9c   :  { %1123 = vmatpush1.bf16.msra.mxu1 %v1973_v26  ;;  %v2059_v26 = vld [vmem:[#allocation5 + $0x444] ss:$8 sps:$4 sm:$0xff]  }
  0x9d   :  { %1205 = vmatpush1.bf16.msra.mxu0 %v1976_v27  ;;  %1124 = vmatprep.subr.bf16.mxu1 %v1981_v28  ;;  %v2057_v27 = vld [vmem:[#allocation5 + $0x440] ss:$8 sps:$4 sm:$0xff]   ;;  %v2062_v28 = vld [vmem:[#allocation5 + $0x454] ss:$8 sps:$4 sm:$0xff]  }
  0x9e   :  { %1206 = vmatprep.subr.bf16.mxu0 %v1984_v29  ;;  %v2060_v29 = vld [vmem:[#allocation5 + $0x450] ss:$8 sps:$4 sm:$0xff]  }
  0xa0   :  { %1125 = vmatpush1.bf16.msra.mxu1 %v1979_v30  ;;  %v2065_v30 = vld [vmem:[#allocation5 + $0x464] ss:$8 sps:$4 sm:$0xff]  }
  0xa1   :  { %1207 = vmatpush1.bf16.msra.mxu0 %v1982_v31  ;;  %1126 = vmatprep.subr.bf16.mxu1 %v1987_v32  ;;  %v2063_v31 = vld [vmem:[#allocation5 + $0x460] ss:$8 sps:$4 sm:$0xff]   ;;  %v2068_v32 = vld [vmem:[#allocation5 + $0x474] ss:$8 sps:$4 sm:$0xff]  }
  0xa2   :  { %1208 = vmatprep.subr.bf16.mxu0 %v1990_v33  ;;  %v2066_v33 = vld [vmem:[#allocation5 + $0x470] ss:$8 sps:$4 sm:$0xff]  }
  0xa4   :  { %1127 = vmatpush1.bf16.msra.mxu1 %v1985_v35  ;;  %v2069_v35 = vld [vmem:[#allocation5 + $0x480] ss:$8 sps:$4 sm:$0xff]  }
  0xa5   :  { %1209 = vmatpush1.bf16.msra.mxu0 %v1988_v38  ;;  %1128 = vmatprep.subr.bf16.mxu1 %v1993_v39  ;;  %v2077_v38 = vld [vmem:[#allocation5 + $0x4a4] ss:$8 sps:$4 sm:$0xff]   ;;  %v2075_v39 = vld [vmem:[#allocation5 + $0x4a0] ss:$8 sps:$4 sm:$0xff]  }
  0xa6   :  { %1210 = vmatprep.subr.bf16.mxu0 %v1996_v41  ;;  %v2078_v41 = vld [vmem:[#allocation5 + $0x4b0] ss:$8 sps:$4 sm:$0xff]  }
  0xa8   :  { %1129 = vmatpush1.bf16.msra.mxu1 %v1991_v42  ;;  %v2083_v42 = vld [vmem:[#allocation5 + $0x4c4] ss:$8 sps:$4 sm:$0xff]  }
  0xa9   :  { %1211 = vmatpush1.bf16.msra.mxu0 %v1994_v43  ;;  %1130 = vmatprep.subr.bf16.mxu1 %v1999_v44  ;;  %v2081_v43 = vld [vmem:[#allocation5 + $0x4c0] ss:$8 sps:$4 sm:$0xff]   ;;  %v2086_v44 = vld [vmem:[#allocation5 + $0x4d4] ss:$8 sps:$4 sm:$0xff]  }
  0xaa   :  { %1212 = vmatprep.subr.bf16.mxu0 %v2002_v45  ;;  %v2084_v45 = vld [vmem:[#allocation5 + $0x4d0] ss:$8 sps:$4 sm:$0xff]  }
  0xac   :  { %1131 = vmatpush1.bf16.msra.mxu1 %v1997_v46  ;;  %v2089_v46 = vld [vmem:[#allocation5 + $0x4e4] ss:$8 sps:$4 sm:$0xff]  }
  0xad   :  { %1213 = vmatpush1.bf16.msra.mxu0 %v2000_v47  ;;  %1132 = vmatprep.subr.bf16.mxu1 %v2005_v48  ;;  %v2087_v47 = vld [vmem:[#allocation5 + $0x4e0] ss:$8 sps:$4 sm:$0xff]   ;;  %v2092_v48 = vld [vmem:[#allocation5 + $0x4f4] ss:$8 sps:$4 sm:$0xff]  }
  0xae   :  { %1214 = vmatprep.subr.bf16.mxu0 %v2008_v49  ;;  %v2090_v49 = vld [vmem:[#allocation5 + $0x4f0] ss:$8 sps:$4 sm:$0xff]  }
  0xb0   :  { %1133 = vmatpush1.bf16.msra.mxu1 %v2003_v50  ;;  %v89_v50 = vld [vmem:[#allocation2 + $0x40] sm:$0xff] }
  0xb1   :  { %1215 = vmatpush1.bf16.msra.mxu0 %v2006_v51  ;;  %1134 = vmatprep.subr.bf16.mxu1 %v2011_v52  ;;  %v99_v51 = vpack.c.bf16 %v89_v50, %v89_v50  ;;  %v2093_v52 = vld [vmem:[#allocation7 + $0x40] sm:$0xff]  }
  0xb2   :  { %1216 = vmatprep.subr.bf16.mxu0 %v2014_v53  ;;  %v2094_v53 = vld [vmem:[#allocation7] sm:$0xff]  }
  0xb4   :  { %1135 = vmatpush1.bf16.msra.mxu1 %v2009_v54  ;;  %v2095_v54 = vld [vmem:[#allocation7 + $0x48] sm:$0xff]  }
  0xb5   :  { %1217 = vmatpush1.bf16.msra.mxu0 %v2012_v55  ;;  %1136 = vmatprep.subr.bf16.mxu1 %v2017_v56  ;;  %v2096_v55 = vld [vmem:[#allocation7 + $0x8] sm:$0xff]   ;;  %v2097_v56 = vld [vmem:[#allocation7 + $0x50] sm:$0xff]  }
  0xb6   :  { %1218 = vmatprep.subr.bf16.mxu0 %v2020_v57  ;;  %v2098_v57 = vld [vmem:[#allocation7 + $0x10] sm:$0xff]  }
  0xb8   :  { %1137 = vmatpush1.bf16.msra.mxu1 %v2015_v58  ;;  %v2099_v58 = vld [vmem:[#allocation7 + $0x58] sm:$0xff]  }
  0xb9   :  { %1219 = vmatpush1.bf16.msra.mxu0 %v2018_v59  ;;  %1138 = vmatprep.subr.bf16.mxu1 %v2023_v60  ;;  %v2100_v59 = vld [vmem:[#allocation7 + $0x18] sm:$0xff]   ;;  %v2101_v60 = vld [vmem:[#allocation7 + $0x60] sm:$0xff]  }
  0xba   :  { %1220 = vmatprep.subr.bf16.mxu0 %v2026_v61  ;;  %v2102_v61 = vld [vmem:[#allocation7 + $0x20] sm:$0xff]  }
  0xbc   :  { %1139 = vmatpush1.bf16.msra.mxu1 %v2021_v62  ;;  %v2103_v62 = vld [vmem:[#allocation7 + $0x68] sm:$0xff]  }
  0xbd   :  { %1221 = vmatpush1.bf16.msra.mxu0 %v2024_v63  ;;  %1140 = vmatprep.subr.bf16.mxu1 %v2029_v0  ;;  %v2104_v63 = vld [vmem:[#allocation7 + $0x28] sm:$0xff]   ;;  %v2105_v0 = vld [vmem:[#allocation7 + $0x70] sm:$0xff]  }
  0xbe   :  { %1222 = vmatprep.subr.bf16.mxu0 %v2032_v1  ;;  %v2106_v1 = vld [vmem:[#allocation7 + $0x30] sm:$0xff]  }
  0xc0   :  { %1141 = vmatpush1.bf16.msra.mxu1 %v2027_v2  ;;  %v2107_v2 = vld [vmem:[#allocation7 + $0x78] sm:$0xff]  }
  0xc1   :  { %1223 = vmatpush1.bf16.msra.mxu0 %v2030_v3  ;;  %1142 = vmatprep.subr.bf16.mxu1 %v2035_v4  ;;  %v2108_v3 = vld [vmem:[#allocation7 + $0x38] sm:$0xff]   ;;  %v2243_v4 = vmov 0.0  }
  0xc2   :  { %1224 = vmatprep.subr.bf16.mxu0 %v2038_v5 }
  0xc4   :  { %1143 = vmatpush1.bf16.msra.mxu1 %v2033_v6 }
  0xc5   :  { %1225 = vmatpush1.bf16.msra.mxu0 %v2036_v7  ;;  %1144 = vmatprep.subr.bf16.mxu1 %v2041_v8 }
  0xc6   :  { %1226 = vmatprep.subr.bf16.mxu0 %v2044_v9  ;;  %v263_v9 = vlaneseq }
  0xc8   :  { %1145 = vmatpush1.bf16.msra.mxu1 %v2039_v10  ;;  %v264_v10 = vshrl.u32 %v263_v9, 7 }
  0xc9   :  { %1227 = vmatpush1.bf16.msra.mxu0 %v2042_v11  ;;  %1775 = vmatprep.subr.bf16.mxu1 %v2093_v52 }
  0xca   :  { %1237 = vmatprep.subr.bf16.mxu0 %v2047_v14  ;;  %v265_v11 = vsub.s32 0, %v264_v10  ;;  %v269_v13 = vsub.s32 1, %v264_v10 }
  0xcb   :  { %1147 = vmatmul.mubr.bf16.vlgmr.msra.gmra.mrb[0].mxu1 %v93_v16 }
  0xcc   :  { %1229 = vmatmul.mubr.bf16.vlgmr.msra.gmra.mrb[0].mxu0 %v97_v17  ;;  %1776 = vmatpush3.bf16.msra.mxu1 %v2094_v53  ;;  %v266_v14 = vrot.slane %v261_v12, %v265_v11  ;;  %v270_v15 = vrot.slane %v261_v12, %v269_v13 }
  0xcd   :  { %1238 = vmatpush1.bf16.msra.mxu0 %v2045_v18  ;;  %1269 = vmatprep.mubr.bf16.mxu0 %v100_v19 }
  0xce   :  { %1239 = vmatprep.subr.bf16.mxu0 %v2050_v20  ;;  %1777 = vmatprep.subr.bf16.mxu1 %v2095_v54 }
  0xd0   :  { %1778 = vmatpush3.bf16.msra.mxu1 %v2096_v55 }
  0xd1   :  { %1240 = vmatpush1.bf16.msra.mxu0 %v2048_v21  ;;  %1779 = vmatprep.subr.bf16.mxu1 %v2097_v56 }
  0xd2   :  { %1241 = vmatprep.subr.bf16.mxu0 %v2053_v22 }
  0xd4   :  { %1780 = vmatpush3.bf16.msra.mxu1 %v2098_v57 }
  0xd5   :  { %1242 = vmatpush1.bf16.msra.mxu0 %v2051_v23  ;;  %1781 = vmatprep.subr.bf16.mxu1 %v2099_v58 }
  0xd6   :  { %1243 = vmatprep.subr.bf16.mxu0 %v2056_v24 }
  0xd8   :  { %1782 = vmatpush3.bf16.msra.mxu1 %v2100_v59 }
  0xd9   :  { %1244 = vmatpush1.bf16.msra.mxu0 %v2054_v25  ;;  %1783 = vmatprep.subr.bf16.mxu1 %v2101_v60 }
  0xda   :  { %1245 = vmatprep.subr.bf16.mxu0 %v2059_v26 }
  0xdc   :  { %1784 = vmatpush3.bf16.msra.mxu1 %v2102_v61 }
  0xdd   :  { %1246 = vmatpush1.bf16.msra.mxu0 %v2057_v27  ;;  %1785 = vmatprep.subr.bf16.mxu1 %v2103_v62  ;;  %v2109_v27 = vld [vmem:[#allocation8] sm:$0xff]  }
  0xde   :  { %1247 = vmatprep.subr.bf16.mxu0 %v2062_v28 }
  0xe0   :  { %1786 = vmatpush3.bf16.msra.mxu1 %v2104_v63 }
  0xe1   :  { %1248 = vmatpush1.bf16.msra.mxu0 %v2060_v29  ;;  %1787 = vmatprep.subr.bf16.mxu1 %v2105_v0  ;;  %v2110_v29 = vld [vmem:[#allocation8 + $0x8] sm:$0xff]  }
  0xe2   :  { %1249 = vmatprep.subr.bf16.mxu0 %v2065_v30  ;;  %v2111_v30 = vld [vmem:[#allocation8 + $0x10] sm:$0xff]  }
  0xe4   :  { %1788 = vmatpush3.bf16.msra.mxu1 %v2106_v1 }
  0xe5   :  { %1250 = vmatpush1.bf16.msra.mxu0 %v2063_v31  ;;  %1789 = vmatprep.subr.bf16.mxu1 %v2107_v2  ;;  %v2112_v31 = vld [vmem:[#allocation8 + $0x18] sm:$0xff]  }
  0xe6   :  { %1251 = vmatprep.subr.bf16.mxu0 %v2068_v32  ;;  %v2113_v32 = vld [vmem:[#allocation8 + $0x20] sm:$0xff]  }
  0xe8   :  { %1790 = vmatpush3.bf16.msra.mxu1 %v2108_v3 }
  0xe9   :  { %1252 = vmatpush1.bf16.msra.mxu0 %v2066_v33  ;;  %1806 = vmatprep.subr.bf16.mxu1 %v2243_v4  ;;  %v2114_v33 = vld [vmem:[#allocation8 + $0x28] sm:$0xff]  }
  0xea   :  { %1253 = vmatprep.subr.bf16.mxu0 %v2071_v34  ;;  %v2115_v34 = vld [vmem:[#allocation8 + $0x30] sm:$0xff]  }
  0xed   :  { %1254 = vmatpush1.bf16.msra.mxu0 %v2069_v35  ;;  %v2116_v35 = vld [vmem:[#allocation8 + $0x38] sm:$0xff]  }
  0xee   :  { %1255 = vmatprep.subr.bf16.mxu0 %v2074_v36 }
  0xf1   :  { %1256 = vmatpush1.bf16.msra.mxu0 %v2072_v37  ;;  %v1749_v37 = vld [vmem:[%s2359_s4] ss:$0 sm:$0xff]  ;;  %s2205_s4 = scalar_lea.vmem %s1579_s8, 64 }
  0xf2   :  { %1257 = vmatprep.subr.bf16.mxu0 %v2077_v38  ;;  %p2206_p4 = scmp.ne.s32.totalorder %s1579_s8, %s2205_s4  ;;  %p2211_p6 = scmp.lt.s32.totalorder %s2205_s4, %s2205_s4 }
  0xf4   :  { %p2212_p7 = por %p2211_p6, %p2210_p5 }
  0xf5   :  { %1258 = vmatpush1.bf16.msra.mxu0 %v2075_v39 }
  0xf6   :  { %1259 = vmatprep.subr.bf16.mxu0 %v2080_v40  ;;  %p2213_p8 = pnand %p2212_p7, %p2206_p4 }
  0xf9   :  { %1260 = vmatpush1.bf16.msra.mxu0 %v2078_v41 }
  0xfa   :  { %1261 = vmatprep.subr.bf16.mxu0 %v2083_v42 }
  0xfd   :  { %1262 = vmatpush1.bf16.msra.mxu0 %v2081_v43 }
  0xfe   :  { %1263 = vmatprep.subr.bf16.mxu0 %v2086_v44 }
 0x101   :  { %1264 = vmatpush1.bf16.msra.mxu0 %v2084_v45  ;;  %v1766_v45 = vld [vmem:[%s2361_s6] ss:$0 sm:$0xff] }
 0x102   :  { %1265 = vmatprep.subr.bf16.mxu0 %v2089_v46 }
 0x105   :  { %1266 = vmatpush1.bf16.msra.mxu0 %v2087_v47 }
 0x106   :  { %1267 = vmatprep.subr.bf16.mxu0 %v2092_v48 }
 0x109   :  { %1268 = vmatpush1.bf16.msra.mxu0 %v2090_v49 }
 0x10c   :  { %1270 = vmatmul.mubr.bf16.vlgmr.msra.gmra.mrb[0].mxu0 %v99_v51 }
 0x19e   :  { %v1148_v5 = vpop.f32.mrb[0].mxu1 }
 0x19f   :  { %v1150_v6 = vpop.f32.mrb[1].mxu1  ;;  %v1826_v16 = vadd.f32 %v1148_v5, %v266_v14 }
 0x1a0   :  { %v1152_v7 = vpop.f32.mrb[2].mxu1  ;;  %v1828_v17 = vadd.f32 %v1150_v6, %v270_v15 }
 0x1a1   :  { %v1153_v8 = vpop.f32.mrb[3].mxu1 }
 0x1df   :  { %v1271_v18 = vpop.f32.mrb[0].mxu0 }
 0x1e0   :  { %v1827_v19 = vadd.f32 %v1826_v16, %v1271_v18  ;;  %v1273_v20 = vpop.f32.mrb[1].mxu0 }
 0x1e1   :  { %v1829_v21 = vadd.f32 %v1828_v17, %v1273_v20  ;;  %v1275_v22 = vpop.f32.mrb[2].mxu0 }
 0x1e2   :  { %v1278_v23 = vmax.f32 %v1827_v19, 0.0  ;;  %v1276_v24 = vpop.f32.mrb[3].mxu0 }
 0x1e3   :  { %v1279_v25 = vmax.f32 %v1829_v21, 0.0 }
 0x1e4   :  { %v1280_v28 = vpack.c.bf16 %v1278_v23, %v1278_v23 }
 0x1e5   :  { %v1281_v26 = vpack.c.bf16 %v1279_v25, %v1279_v25 }
 0x1e7   :  { %1449 = vmatprep.mubr.bf16.mxu1 %v1281_v26 }
 0x1e8   :  { %1450 = vmatmul.mubr.bf16.vlgmr.msra.gmra.mrb[4].mxu1 %v1280_v28 }
 0x1e9   :  { %1807 = vmatpush3.bf16.msra.mxu1 %v2109_v27  ;;  %1822 = vmatprep.mubr.msk.bf16.mxu1 %vm2244_vm0, %v2243_v4 }
 0x1ea   :  { %1808 = vmatprep.subr.bf16.mxu1 %v2243_v4 }
 0x1ed   :  { %1809 = vmatpush3.bf16.msra.mxu1 %v2110_v29 }
 0x1ee   :  { %1810 = vmatprep.subr.bf16.mxu1 %v2243_v4 }
 0x1f1   :  { %1811 = vmatpush3.bf16.msra.mxu1 %v2111_v30 }
 0x1f2   :  { %1812 = vmatprep.subr.bf16.mxu1 %v2243_v4 }
 0x1f5   :  { %1813 = vmatpush3.bf16.msra.mxu1 %v2112_v31 }
 0x1f6   :  { %1814 = vmatprep.subr.bf16.mxu1 %v2243_v4 }
 0x1f9   :  { %1815 = vmatpush3.bf16.msra.mxu1 %v2113_v32 }
 0x1fa   :  { %1816 = vmatprep.subr.bf16.mxu1 %v2243_v4 }
 0x1fd   :  { %1817 = vmatpush3.bf16.msra.mxu1 %v2114_v33 }
 0x1fe   :  { %1818 = vmatprep.subr.bf16.mxu1 %v2243_v4 }
 0x201   :  { %1819 = vmatpush3.bf16.msra.mxu1 %v2115_v34 }
 0x202   :  { %1820 = vmatprep.subr.bf16.mxu1 %v2243_v4 }
 0x205   :  { %1821 = vmatpush3.bf16.msra.mxu1 %v2116_v35 }
 0x2bb   :  { %v1791_v36 = vpop.f32.mrb[4].mxu1 }
 0x2bc   :  { %v1792_v38 = vpop.f32.mrb[5].mxu1 }
 0x2bd   :  { %v1793_v39 = vadd.f32 %v1792_v38, %v1791_v36  ;;  %v1794_v40 = vpop.f32.mrb[6].mxu1 }
 0x2be   :  { %v1795_v41 = vpop.f32.mrb[7].mxu1 }
 0x2bf   :  { %v1452_v42 = vadd.f32 %v1793_v39, %v1749_v37 }
 0x2c1   :  { %v1457_v43 = vmax.f32 %v1452_v42, 0.0 }
 0x2c3   :  { %v1458_v44 = vpack.c.bf16 %v1457_v43, %v1457_v43 }
 0x2c5   :  { %1823 = vmatmul.mubr.bf16.vlgmr.msra.gmra.mrb[8].mxu1 %v1458_v44 }
 0x398   :  { %v1564_v46 = vpop.f32.mrb[8].mxu1 }
 0x399   :  { %v1565_v47 = vadd.f32 %v1766_v45, %v1564_v46  ;;  %v1824_v48 = vpop.f32.mrb[9].mxu1 }
 0x39a   :  { %v1567_v49 = vpop.f32.mrb[10].mxu1 }
 0x39b   :  { %v1570_v50 = vpack.c.bf16 %v1565_v47, %v1565_v47  ;;  %v1825_v51 = vpop.f32.mrb[11].mxu1 }
 0x39d   :  { %1571 = vst [vmem:[#allocation10] sm:$0xf] %v1570_v50 }
 0x39e   :  { %2216 = shalt.err (!%p2213_p8)
}
 0x39f   :  { %s2217_s6 = scalar_lea.hbm %s2362_s7, 64 }
 0x3a0   :  { %p2218_p9 = scmp.ne.s32.totalorder %s2362_s7, %s2217_s6  ;;  %p2221_p10 = scmp.lt.u32.totalorder %s2217_s6, %s2362_s7 }
 0x3a2   :  { %p2223_p11 = pnand %p2221_p10, %p2218_p9 }
 0x3a4   :  { %2226 = shalt.err (!%p2223_p11)
}
 0x3a5   :  { %1581 = dma.vmem_to_hbm [thread:$0]  %s1579_s8, 64, %s2362_s7, [#allocation4]  }
 0x3a6   :  { %2233 = dma.done.wait [#allocation4], 64  }
 0x3a7   :  { %2234 = vsyncadd [#allocation4], 4294967232 }
 0x3a8   :  { %1585 = vsyncpa [#allocation3], 1 }
 0x3a9   :  { %1586 = vsyncpa [#allocation6], 1 }
 0x3aa   :  { %1587 = vsyncpa [#allocation9], 1 }
 0x3ab   :  { %1588 = vsyncpa [#allocation4], 1 }

</bundles_post_ra>
